<compile_context>
chip_gen: v7x
topology: tpu7x:2x2x1
jax: 0.10.0
libtpu: 0.0.40
codegen_flags: <defaults>
</compile_context>

<pallas_src>
import functools

import numpy as np

import jax
import jax.numpy as jnp
from jax.experimental import pallas as pl
from jax.experimental.pallas import tpu as pltpu


@functools.lru_cache(maxsize=1)
def _chip_info():
    """Returns (multi_tensorcore, safe_vmem_cap_bytes) for the default backend."""
    try:
        kind = jax.devices()[0].device_kind.lower()
    except Exception:  # pragma: no cover - defensive
        return False, 56 << 20
    is_v7 = "v7" in kind
    multi_tc = is_v7 or ("v4" in kind) or ("v5p" in kind)
    # v7x has 64 MiB physical VMEM per TC; older generations have 128 MiB.
    vmem_cap = (56 << 20) if is_v7 else (100 << 20)
    return multi_tc, vmem_cap


def _make_translate_kernel(shift):
    """shift: static, non-negative roll amount along the flat pixel axis."""

    def kernel(mask_ref, x_ref, o_ref):
        x = x_ref[...]                                          # (bp, HW_pad)
        rolled = pltpu.roll(x, shift, axis=1) if shift else x   # XLU, no MXU
        # mask_ref is (1, HW_pad) int32: nonzero where the shifted pixel is
        # in-bounds. jnp.where keeps the border exactly zero even for
        # NaN/Inf inputs (unlike a 0/1 multiply).
        keep = mask_ref[...] != 0
        o_ref[...] = jnp.where(keep, rolled, jnp.zeros_like(rolled))

    return kernel


@functools.lru_cache(maxsize=None)
def _build_translate(shape, dtype, tx, ty):
    """Returns a jitted NCHW -> NCHW translation for static (tx, ty)."""
    N, C, H, W = shape
    NC, HW = N * C, H * W
    dtype = np.dtype(dtype)
    itemsize = dtype.itemsize

    # Lane-dense flat pixel axis (pad to a multiple of 128 if needed).
    HW_pad = pl.cdiv(HW, 128) * 128
    row_bytes = HW_pad * itemsize

    # out_flat[g] = in_flat[g - (ty*W + tx)] for in-bounds pixels.
    shift = (ty * W + tx) % HW_pad

    # Border mask: out[i, j] valid iff (i - ty, j - tx) lies inside the image.
    i_lo, i_hi = max(ty, 0), H + min(ty, 0)
    j_lo, j_hi = max(tx, 0), W + min(tx, 0)
    g = np.arange(HW_pad)
    ii, jj = g // W, g % W
    valid = (g < HW) & (ii >= i_lo) & (ii < i_hi) & (jj >= j_lo) & (jj < j_hi)
    mask_np = valid.astype(np.int32).reshape(1, HW_pad)

    multi_tc, vmem_cap = _chip_info()

    # Block sizing: ~3 MiB of whole planes per step (mem-bound plateau 1-4 MiB).
    max_block_bytes = 3 << 20
    bp = max(1, min(NC, max_block_bytes // row_bytes))
    if multi_tc and NC >= 2:
        bp = min(bp, pl.cdiv(NC, 2))          # >=2 parallel steps -> both TCs stream
    if bp < NC:
        # Hard (8,128) layout constraint + dtype-packed sublane tile, aligned DOWN
        # so the byte budget is never exceeded by rounding up.
        align = max(8, 32 // itemsize)        # 8 f32 / 16 bf16 / 32 int8
        if bp >= align:
            bp = (bp // align) * align
        elif bp >= 8:
            bp = (bp // 8) * 8
        elif NC >= 8:
            bp = 8                            # smallest legal non-full block
        else:
            bp = NC                           # full extent (no split possible)
    grid = (pl.cdiv(NC, bp),)

    # Scoped VMEM: 2x in + 2x out double buffers + slack (mask, internal scratch).
    block_bytes = bp * row_bytes
    need = 4 * block_bytes + (2 << 20)
    vmem_limit = int(min(vmem_cap, max(32 << 20, need)))

    call = pl.pallas_call(
        _make_translate_kernel(shift),
        out_shape=jax.ShapeDtypeStruct((NC, HW_pad), dtype),
        grid=grid,
        in_specs=[
            pl.BlockSpec((1, HW_pad), lambda b: (0, 0)),   # tiny constant mask
            pl.BlockSpec((bp, HW_pad), lambda b: (b, 0)),
        ],
        out_specs=pl.BlockSpec((bp, HW_pad), lambda b: (b, 0)),
        compiler_params=pltpu.CompilerParams(
            dimension_semantics=("parallel",),
            vmem_limit_bytes=vmem_limit),
    )

    mask = jnp.asarray(mask_np)

    def run(x):
        xf = x.reshape(NC, HW)
        if HW_pad != HW:
            xf = jnp.pad(xf, ((0, 0), (0, HW_pad - HW)))
        y = call(mask, xf)
        if HW_pad != HW:
            y = y[:, :HW]
        return y.reshape(N, C, H, W)

    return jax.jit(run)


def translate_images(x, tx, ty):
    """Apply integer translation (tx right, ty down, zero fill) to an NCHW tensor."""
    tx, ty = int(tx), int(ty)
    if tx == 0 and ty == 0:
        return x
    return _build_translate(tuple(x.shape), np.dtype(x.dtype), tx, ty)(x)


class Translate:
    """Applies a fixed integer [tx, ty] translation to every tensor in the dict(s)."""

    def __init__(self, translate):
        self.translate = translate  # [tx, ty]

    def __call__(self, inputs, outputs=None):
        tx, ty = self.translate
        inputs = {k: translate_images(v, tx, ty) for k, v in inputs.items()}
        if outputs is not None:
            outputs = {k: translate_images(v, tx, ty) for k, v in outputs.items()}
            return inputs, outputs
        return inputs


class RandomTranslate:
    def __init__(self, translate):
        if isinstance(translate[0], (list, tuple)):
            self.x_translate = list(translate[0])
            self.y_translate = list(translate[1])
        else:
            self.x_translate = [-translate[0], translate[0]]
            self.y_translate = [-translate[1], translate[1]]

    def __call__(self, key, inputs, outputs=None):
        # Mirrors the PyTorch module: draw a continuous uniform and round to int.
        kx, ky = jax.random.split(key)
        tx = int(round(float(jax.random.uniform(
            kx, (), minval=float(self.x_translate[0]),
            maxval=float(self.x_translate[1])))))
        ty = int(round(float(jax.random.uniform(
            ky, (), minval=float(self.y_translate[0]),
            maxval=float(self.y_translate[1])))))
        return Translate([tx, ty])(inputs, outputs)


def _reference_translate(x, tx, ty):
    """Pure-JAX reference: zero-pad then crop."""
    N, C, H, W = x.shape
    pad = max(abs(int(tx)), abs(int(ty)), 1)
    xp = jnp.pad(x, ((0, 0), (0, 0), (pad, pad), (pad, pad)))
    return xp[:, :, pad - ty: pad - ty + H, pad - tx: pad - tx + W]


if __name__ == "__main__":
    key = jax.random.PRNGKey(0)
    k_in1, k_in2, k_out, k_rand, k_small = jax.random.split(key, 5)

    inputs = {
        "image": jax.random.normal(k_in1, (2, 4, 16, 16), dtype=jnp.float32),
        "depth": jax.random.normal(k_in2, (2, 1, 16, 16), dtype=jnp.float32),
    }
    outputs = {
        "target": jax.random.normal(k_out, (2, 4, 16, 16), dtype=jnp.float32),
    }

    # Direct kernel checks over representative static shifts
    # (positive / negative / zero / out-of-range -> all-zero output).
    for (tx, ty) in [(3, 2), (-5, 7), (0, -4), (0, 0), (16, -1)]:
        for name, arr in {**inputs, **outputs}.items():
            got = translate_images(arr, tx, ty)
            ref = _reference_translate(arr, tx, ty)
            assert jnp.allclose(got, ref, atol=1e-6), (name, tx, ty)

    # Non-128-multiple H*W (7x7 planes) exercises the lane-padding path.
    small = jax.random.normal(k_small, (2, 3, 7, 7), dtype=jnp.float32)
    for (tx, ty) in [(2, -1), (-3, 3)]:
        got = translate_images(small, tx, ty)
        ref = _reference_translate(small, tx, ty)
        assert jnp.allclose(got, ref, atol=1e-6), ("small", tx, ty)

    # NaN input must NOT leak into the zero-padded border (jnp.where fix).
    nan_img = inputs["image"].at[:, :, 15, 15].set(jnp.nan)
    got = translate_images(nan_img, 2, 3)
    ref = _reference_translate(nan_img, 2, 3)
    assert jnp.allclose(got, ref, atol=1e-6, equal_nan=True), "nan border leak"

    # Module-level runs (fixed Translate, then RandomTranslate with a key).
    new_inputs, new_outputs = Translate([2, -3])(dict(inputs), dict(outputs))
    for name, orig in inputs.items():
        ref = _reference_translate(orig, 2, -3)
        assert jnp.allclose(new_inputs[name], ref, atol=1e-6), name
    for name, orig in outputs.items():
        ref = _reference_translate(orig, 2, -3)
        assert jnp.allclose(new_outputs[name], ref, atol=1e-6), name

    rand_inputs = RandomTranslate([3, 3])(k_rand, dict(inputs))

    jax.block_until_ready(jax.tree_util.tree_leaves(
        (new_inputs, new_outputs, rand_inputs)))
    print("KERNEL_OK")
</pallas_src>

<mosaic_0001>
module attributes {stable_mosaic.version = 11 : i64} {
  func.func @kernel(%arg0: i32, %arg1: memref<1x256xi32, #tpu.memory_space<vmem>>, %arg2: memref<8x256xf32, #tpu.memory_space<vmem>>, %arg3: memref<8x256xf32, #tpu.memory_space<vmem>>) attributes {dimension_semantics = [#tpu.dimension_semantics<parallel>], iteration_bounds = array<i64: 1>, scalar_prefetch = 0 : i64, scratch_operands = 0 : i64, tpu.core_type = #tpu.core_type<tc>, window_params = [{pipeline_mode = #tpu.pipeline_mode<synchronous>, transform_indices = @transform_0, window_bounds = array<i64: 1, 256>}, {transform_indices = @transform_1, window_bounds = array<i64: 8, 256>}, {transform_indices = @transform_2, window_bounds = array<i64: 8, 256>}]} {
    %c0 = arith.constant 0 : index
    %c0_0 = arith.constant 0 : index
    %0 = vector.load %arg2[%c0, %c0_0] : memref<8x256xf32, #tpu.memory_space<vmem>>, vector<8x256xf32>
    %c35_i32 = arith.constant 35 : i32
    %1 = tpu.dynamic_rotate %0 by %c35_i32 dim 1 : vector<8x256xf32>, i32 -> vector<8x256xf32>
    %c0_1 = arith.constant 0 : index
    %c0_2 = arith.constant 0 : index
    %2 = vector.load %arg1[%c0_1, %c0_2] : memref<1x256xi32, #tpu.memory_space<vmem>>, vector<1x256xi32>
    %c0_i32 = arith.constant 0 : i32
    %3 = vector.broadcast %c0_i32 : i32 to vector<1x256xi32>
    %4 = arith.cmpi ne, %2, %3 : vector<1x256xi32>
    %cst = arith.constant 0.000000e+00 : f32
    %5 = vector.broadcast %cst : f32 to vector<8x256xf32>
    %6 = vector.shape_cast %4 : vector<1x256xi1> to vector<1x256xi1>
    %7 = vector.broadcast %6 : vector<1x256xi1> to vector<8x256xi1>
    %8 = arith.select %7, %1, %5 : vector<8x256xi1>, vector<8x256xf32>
    %c0_3 = arith.constant 0 : index
    %c0_4 = arith.constant 0 : index
    %9 = vector.load %arg3[%c0_3, %c0_4] : memref<8x256xf32, #tpu.memory_space<vmem>>, vector<8x256xf32>
    tpu.vector_store %arg3[%c0_3, %c0_4], %8 {strides = array<i32>} : memref<8x256xf32, #tpu.memory_space<vmem>>, vector<8x256xf32>,
    return
  }
  func.func @transform_0(%arg0: i32) -> (i32, i32) {
    %c0_i32 = arith.constant 0 : i32
    %c0_i32_0 = arith.constant 0 : i32
    %c0_i32_1 = arith.constant 0 : i32
    return %c0_i32, %c0_i32_0 : i32, i32
  }
  func.func @transform_1(%arg0: i32) -> (i32, i32) {
    %c0_i32 = arith.constant 0 : i32
    %c0_i32_0 = arith.constant 0 : i32
    return %arg0, %c0_i32 : i32, i32
  }
  func.func @transform_2(%arg0: i32) -> (i32, i32) {
    %c0_i32 = arith.constant 0 : i32
    %c0_i32_0 = arith.constant 0 : i32
    return %arg0, %c0_i32 : i32, i32
  }
}

</mosaic_0001>

<bundles_post_ra>
// kernel: run.1
= control target key start
LH: loop header
LB: loop body
LE: loop exit
PB: predicated region body
PF: predicated region fallthrough
CT: control target
= control target key end

     0   :  { %s45_s11 = smov 35   ;;  %v17_v2 = vlaneseq  ;;  %v46_v7 = vmov 0   ;;  %s77_s1 = inlined_call_operand.vmem [shape: f32[8,256], index: 1, kind: input, shape index: {}]   ;;  %s78_s0 = inlined_call_operand.vmem [shape: s32[1,256], index: 0, kind: input, shape index: {}]   ;;  %s79_s2 = inlined_call_operand.vmem [shape: f32[8,256], index: 2, kind: output, shape index: {}]  }
   0x1   :  { %v11_v0 = vld [vmem:[%s77_s1] sm:$0xff]  ;;  %v12_v1 = vld [vmem:[%s77_s1 + $0x8] sm:$0xff] }
   0x2   :  { %13 = vrot.lane.b32.xlu0 %v11_v0, %s45_s11  ;;  %v22_v3 = vld [vmem:[%s78_s0] sm:$0x3]  ;;  %v26_v4 = vshrl.u32 %v17_v2, 7  ;;  %v18_v9 = vand.u32 127, %v17_v2 }
   0x3   :  { %vm23_vm0 = vcmp.ne.s32.totalorder %v22_v3, 0 }
   0x4   :  { %v27_v5 = vsub.s32 0, %v26_v4  ;;  %v31_v6 = vsub.s32 1, %v26_v4  ;;  %v24_v8 = vsel %vm23_vm0, 1, %v46_v7  ;;  %vm19_vm1 = vcmp.lt.s32.totalorder %v18_v9, 35 }
   0x6   :  { %15 = vrot.lane.b32.xlu0 %v12_v1, %s45_s11  ;;  %v28_v10 = vrot.slane %v24_v8, %v27_v5  ;;  %v32_v11 = vrot.slane %v24_v8, %v31_v6 }
   0x8   :  { %vm33_vm2 = vcmp.eq.s32.totalorder %v28_v10, 1  ;;  %vm34_vm3 = vcmp.eq.s32.totalorder %v32_v11, 1 }
  0x74   :  { %v14_v12 = vpop.permute.xlu0 %13 }
  0x78   :  { %v16_v13 = vpop.permute.xlu0 %15 }
  0x79   :  { %v20_v14 = vsel %vm19_vm1, %v14_v12, %v16_v13  ;;  %v21_v15 = vsel %vm19_vm1, %v16_v13, %v14_v12 }
  0x7a   :  { %v35_v16 = vsel %vm33_vm2, %v21_v15, 0.0  ;;  %v36_v17 = vsel %vm34_vm3, %v20_v14, 0.0 }
  0x7b   :  { %37 = vst [vmem:[%s79_s2] sm:$0xff] %v35_v16  ;;  %38 = vst [vmem:[%s79_s2 + $0x8] sm:$0xff] %v36_v17 }

</bundles_post_ra>
